<compile_context>
chip_gen: v7x
topology: tpu7x:2x2x1
jax: 0.10.0
libtpu: 0.0.40
codegen_flags: <defaults>
</compile_context>

<pallas_src>
import functools

import jax
import jax.numpy as jnp
from jax import lax
from jax.experimental import pallas as pl
from jax.experimental.pallas import tpu as pltpu

EPS = 1e-5   # PyTorch nn.LayerNorm default
LANE = 128


def _round_up(n, m):
    return (n + m - 1) // m * m


def _ln_full(h, gamma, beta):
    """LayerNorm over the full (unpadded) feature axis."""
    mu = jnp.mean(h, axis=-1, keepdims=True)
    var = jnp.mean(h * h, axis=-1, keepdims=True) - mu * mu
    a = lax.rsqrt(var + EPS)          # (rows, 1) -> EUP
    b = -mu * a                       # (rows, 1) cheap per-row scalar
    return (h * a + b) * gamma + beta


def _ln_padded(h, gamma, beta, inv_n):
    """LayerNorm where the last axis is zero-padded beyond the true width.

    Padded lanes of `h` are exactly zero and gamma/beta are zero there, so
    plain lane sums with a 1/true_n scale give the correct statistics and the
    padded output lanes remain zero.
    """
    mu = jnp.sum(h, axis=-1, keepdims=True) * inv_n
    var = jnp.sum(h * h, axis=-1, keepdims=True) * inv_n - mu * mu
    a = lax.rsqrt(var + EPS)
    b = -mu * a
    return (h * a + b) * gamma + beta


def autoencoder_kernel(
    x_ref,
    ln1_g, ln1_b,            # LayerNorm(input_dim)    [encoder]
    w_enc, b_enc,            # Linear(D, E_pad)
    ln2_g, ln2_b,            # LayerNorm(encoding_dim) [encoder]
    ln3_g, ln3_b,            # LayerNorm(encoding_dim) [decoder]
    w_dec, b_dec,            # Linear(E_pad, D)
    ln4_g, ln4_b,            # LayerNorm(input_dim)    [decoder]
    o_ref,
    *, inv_e, dot_dtype,
):
    x = x_ref[...]

    # ---- encoder ----
    h = _ln_full(x, ln1_g[...], ln1_b[...])
    h = jnp.dot(h.astype(dot_dtype), w_enc[...],
                preferred_element_type=jnp.float32) + b_enc[...]
    h = _ln_padded(h, ln2_g[...], ln2_b[...], inv_e)
    h = jnp.maximum(h, 0.0)  # ReLU

    # ---- decoder ----
    h = _ln_padded(h, ln3_g[...], ln3_b[...], inv_e)
    h = jnp.dot(h.astype(dot_dtype), w_dec[...],
                preferred_element_type=jnp.float32) + b_dec[...]
    h = _ln_full(h, ln4_g[...], ln4_b[...])
    o_ref[...] = jax.nn.sigmoid(h)


@functools.partial(jax.jit, static_argnames=("tile_b", "dot_dtype"))
def autoencoder_forward(x, params, *, tile_b=256, dot_dtype=jnp.bfloat16):
    B, D = x.shape
    E = params["w_enc"].shape[1]
    E_pad = _round_up(E, LANE)

    # Batch tile: large, sublane-aligned (multiple of 8), never bigger than
    # the (rounded) batch. For tiny B this gives a single grid step.
    tb = _round_up(min(tile_b, _round_up(B, 8)), 8)
    B_pad = _round_up(B, tb)
    x_p = x if B_pad == B else jnp.pad(x, ((0, B_pad - B), (0, 0)))

    # Zero-pad the encoding dim to a lane-dense multiple of 128.
    dE = E_pad - E
    w_enc = jnp.pad(params["w_enc"], ((0, 0), (0, dE))).astype(dot_dtype)
    b_enc = jnp.pad(params["b_enc"], ((0, 0), (0, dE)))
    ln2_g = jnp.pad(params["ln2_g"], ((0, 0), (0, dE)))
    ln2_b = jnp.pad(params["ln2_b"], ((0, 0), (0, dE)))
    ln3_g = jnp.pad(params["ln3_g"], ((0, 0), (0, dE)))
    ln3_b = jnp.pad(params["ln3_b"], ((0, 0), (0, dE)))
    w_dec = jnp.pad(params["w_dec"], ((0, dE), (0, 0))).astype(dot_dtype)

    kernel = functools.partial(
        autoencoder_kernel, inv_e=1.0 / float(E), dot_dtype=dot_dtype)

    # Parameters are tiny and held resident in VMEM for every grid step
    # (constant index_map); only the batch axis of x / out is tiled.
    def param_spec(shape):
        return pl.BlockSpec(shape, lambda i: (0,) * len(shape))

    in_specs = [
        pl.BlockSpec((tb, D), lambda i: (i, 0)),       # x
        param_spec((1, D)), param_spec((1, D)),        # ln1
        param_spec((D, E_pad)), param_spec((1, E_pad)),  # enc linear
        param_spec((1, E_pad)), param_spec((1, E_pad)),  # ln2
        param_spec((1, E_pad)), param_spec((1, E_pad)),  # ln3
        param_spec((E_pad, D)), param_spec((1, D)),      # dec linear
        param_spec((1, D)), param_spec((1, D)),          # ln4
    ]
    out_spec = pl.BlockSpec((tb, D), lambda i: (i, 0))

    out = pl.pallas_call(
        kernel,
        out_shape=jax.ShapeDtypeStruct((B_pad, D), jnp.float32),
        grid_spec=pltpu.PrefetchScalarGridSpec(
            num_scalar_prefetch=0,
            grid=(B_pad // tb,),
            in_specs=in_specs,
            out_specs=out_spec,
        ),
        compiler_params=pltpu.CompilerParams(
            dimension_semantics=("parallel",),
        ),
    )(
        x_p,
        params["ln1_g"], params["ln1_b"],
        w_enc, b_enc,
        ln2_g, ln2_b,
        ln3_g, ln3_b,
        w_dec, params["b_dec"],
        params["ln4_g"], params["ln4_b"],
    )
    return out[:B]
    # TODO(synk): for production-scale D/E on v7x (64 MiB VMEM), add a K-axis
    # grid over D with an f32 accumulator instead of holding full weights.


def init_params(key, input_dim, encoding_dim):
    """Deterministic init mirroring PyTorch defaults (LayerNorm: gamma=1, beta=0;
    Linear: U(-1/sqrt(fan_in), 1/sqrt(fan_in)) for weight and bias)."""
    k1, k2, k3, k4 = jax.random.split(key, 4)
    lim_e = 1.0 / jnp.sqrt(float(input_dim))
    lim_d = 1.0 / jnp.sqrt(float(encoding_dim))
    return {
        "ln1_g": jnp.ones((1, input_dim), jnp.float32),
        "ln1_b": jnp.zeros((1, input_dim), jnp.float32),
        # stored as (in, out) so the kernel does h @ W
        "w_enc": jax.random.uniform(k1, (input_dim, encoding_dim),
                                    jnp.float32, -lim_e, lim_e),
        "b_enc": jax.random.uniform(k2, (1, encoding_dim),
                                    jnp.float32, -lim_e, lim_e),
        "ln2_g": jnp.ones((1, encoding_dim), jnp.float32),
        "ln2_b": jnp.zeros((1, encoding_dim), jnp.float32),
        "ln3_g": jnp.ones((1, encoding_dim), jnp.float32),
        "ln3_b": jnp.zeros((1, encoding_dim), jnp.float32),
        "w_dec": jax.random.uniform(k3, (encoding_dim, input_dim),
                                    jnp.float32, -lim_d, lim_d),
        "b_dec": jax.random.uniform(k4, (1, input_dim),
                                    jnp.float32, -lim_d, lim_d),
        "ln4_g": jnp.ones((1, input_dim), jnp.float32),
        "ln4_b": jnp.zeros((1, input_dim), jnp.float32),
    }


def reference_forward(x, p):
    """Pure-JAX f32 reference matching the PyTorch module."""
    def ln(h, g, b):
        mu = jnp.mean(h, -1, keepdims=True)
        var = jnp.mean((h - mu) ** 2, -1, keepdims=True)
        return (h - mu) / jnp.sqrt(var + EPS) * g + b
    h = ln(x, p["ln1_g"], p["ln1_b"])
    h = h @ p["w_enc"] + p["b_enc"]
    h = jnp.maximum(ln(h, p["ln2_g"], p["ln2_b"]), 0.0)
    h = ln(h, p["ln3_g"], p["ln3_b"])
    h = h @ p["w_dec"] + p["b_dec"]
    return jax.nn.sigmoid(ln(h, p["ln4_g"], p["ln4_b"]))


if __name__ == "__main__":
    input_dim = 128
    encoding_dim = 32
    batch = 16

    key = jax.random.PRNGKey(0)
    kx, kp = jax.random.split(key)
    x = jax.random.normal(kx, (batch, input_dim), jnp.float32)
    params = init_params(kp, input_dim, encoding_dim)

    ref = reference_forward(x, params)

    # Structure check with f32 MXU operands (tight tolerance).
    out_f32 = jax.block_until_ready(
        autoencoder_forward(x, params, dot_dtype=jnp.float32))
    assert out_f32.shape == (batch, input_dim)
    assert jnp.max(jnp.abs(out_f32 - ref)) < 1e-3, "f32-dot mismatch vs reference"

    # Fast default path: bf16 operands into the dots, f32 accumulation,
    # f32 LayerNorm / ReLU / sigmoid.
    out = jax.block_until_ready(autoencoder_forward(x, params))
    assert out.shape == (batch, input_dim)
    assert jnp.max(jnp.abs(out - ref)) < 3e-2, "bf16-dot mismatch vs reference"

    print("KERNEL_OK")
</pallas_src>

<mosaic_0001>
module attributes {stable_mosaic.version = 11 : i64} {
  func.func @autoencoder_kernel(%arg0: i32, %arg1: memref<16x128xf32, #tpu.memory_space<vmem>>, %arg2: memref<1x128xf32, #tpu.memory_space<vmem>>, %arg3: memref<1x128xf32, #tpu.memory_space<vmem>>, %arg4: memref<128x128xf32, #tpu.memory_space<vmem>>, %arg5: memref<1x128xf32, #tpu.memory_space<vmem>>, %arg6: memref<1x128xf32, #tpu.memory_space<vmem>>, %arg7: memref<1x128xf32, #tpu.memory_space<vmem>>, %arg8: memref<1x128xf32, #tpu.memory_space<vmem>>, %arg9: memref<1x128xf32, #tpu.memory_space<vmem>>, %arg10: memref<128x128xf32, #tpu.memory_space<vmem>>, %arg11: memref<1x128xf32, #tpu.memory_space<vmem>>, %arg12: memref<1x128xf32, #tpu.memory_space<vmem>>, %arg13: memref<1x128xf32, #tpu.memory_space<vmem>>, %arg14: memref<16x128xf32, #tpu.memory_space<vmem>>) attributes {dimension_semantics = [#tpu.dimension_semantics<parallel>], iteration_bounds = array<i64: 1>, scalar_prefetch = 0 : i64, scratch_operands = 0 : i64, tpu.core_type = #tpu.core_type<tc>, window_params = [{transform_indices = @transform_0, window_bounds = array<i64: 16, 128>}, {pipeline_mode = #tpu.pipeline_mode<synchronous>, transform_indices = @transform_1, window_bounds = array<i64: 1, 128>}, {pipeline_mode = #tpu.pipeline_mode<synchronous>, transform_indices = @transform_2, window_bounds = array<i64: 1, 128>}, {pipeline_mode = #tpu.pipeline_mode<synchronous>, transform_indices = @transform_3, window_bounds = array<i64: 128, 128>}, {pipeline_mode = #tpu.pipeline_mode<synchronous>, transform_indices = @transform_4, window_bounds = array<i64: 1, 128>}, {pipeline_mode = #tpu.pipeline_mode<synchronous>, transform_indices = @transform_5, window_bounds = array<i64: 1, 128>}, {pipeline_mode = #tpu.pipeline_mode<synchronous>, transform_indices = @transform_6, window_bounds = array<i64: 1, 128>}, {pipeline_mode = #tpu.pipeline_mode<synchronous>, transform_indices = @transform_7, window_bounds = array<i64: 1, 128>}, {pipeline_mode = #tpu.pipeline_mode<synchronous>, transform_indices = @transform_8, window_bounds = array<i64: 1, 128>}, {pipeline_mode = #tpu.pipeline_mode<synchronous>, transform_indices = @transform_9, window_bounds = array<i64: 128, 128>}, {pipeline_mode = #tpu.pipeline_mode<synchronous>, transform_indices = @transform_10, window_bounds = array<i64: 1, 128>}, {pipeline_mode = #tpu.pipeline_mode<synchronous>, transform_indices = @transform_11, window_bounds = array<i64: 1, 128>}, {pipeline_mode = #tpu.pipeline_mode<synchronous>, transform_indices = @transform_12, window_bounds = array<i64: 1, 128>}, {transform_indices = @transform_13, window_bounds = array<i64: 16, 128>}]} {
    %c0 = arith.constant 0 : index
    %c0_0 = arith.constant 0 : index
    %0 = vector.load %arg1[%c0, %c0_0] : memref<16x128xf32, #tpu.memory_space<vmem>>, vector<16x128xf32>
    %c0_1 = arith.constant 0 : index
    %c0_2 = arith.constant 0 : index
    %1 = vector.load %arg2[%c0_1, %c0_2] : memref<1x128xf32, #tpu.memory_space<vmem>>, vector<1x128xf32>
    %c0_3 = arith.constant 0 : index
    %c0_4 = arith.constant 0 : index
    %2 = vector.load %arg3[%c0_3, %c0_4] : memref<1x128xf32, #tpu.memory_space<vmem>>, vector<1x128xf32>
    %cst = arith.constant dense<0.000000e+00> : vector<16xf32>
    %3 = vector.multi_reduction <add>, %0, %cst [1] : vector<16x128xf32> to vector<16xf32>
    %4 = vector.shape_cast %3 : vector<16xf32> to vector<16x1xf32>
    %cst_5 = arith.constant 1.280000e+02 : f32
    %5 = vector.broadcast %cst_5 : f32 to vector<16x1xf32>
    %6 = arith.divf %4, %5 : vector<16x1xf32>
    %7 = arith.mulf %0, %0 : vector<16x128xf32>
    %cst_6 = arith.constant dense<0.000000e+00> : vector<16xf32>
    %8 = vector.multi_reduction <add>, %7, %cst_6 [1] : vector<16x128xf32> to vector<16xf32>
    %9 = vector.shape_cast %8 : vector<16xf32> to vector<16x1xf32>
    %cst_7 = arith.constant 1.280000e+02 : f32
    %10 = vector.broadcast %cst_7 : f32 to vector<16x1xf32>
    %11 = arith.divf %9, %10 : vector<16x1xf32>
    %12 = arith.mulf %6, %6 : vector<16x1xf32>
    %13 = arith.subf %11, %12 : vector<16x1xf32>
    %cst_8 = arith.constant 9.99999974E-6 : f32
    %14 = vector.broadcast %cst_8 : f32 to vector<16x1xf32>
    %15 = arith.addf %13, %14 : vector<16x1xf32>
    %16 = math.rsqrt %15 : vector<16x1xf32>
    %cst_9 = arith.constant 0.000000e+00 : f32
    %17 = vector.broadcast %cst_9 : f32 to vector<16x1xf32>
    %18 = arith.subf %17, %6 : vector<16x1xf32>
    %19 = arith.mulf %18, %16 : vector<16x1xf32>
    %20 = vector.broadcast %16 : vector<16x1xf32> to vector<16x128xf32>
    %21 = arith.mulf %0, %20 : vector<16x128xf32>
    %22 = vector.broadcast %19 : vector<16x1xf32> to vector<16x128xf32>
    %23 = arith.addf %21, %22 : vector<16x128xf32>
    %24 = vector.broadcast %1 : vector<1x128xf32> to vector<16x128xf32>
    %25 = arith.mulf %23, %24 : vector<16x128xf32>
    %26 = vector.broadcast %2 : vector<1x128xf32> to vector<16x128xf32>
    %27 = arith.addf %25, %26 : vector<16x128xf32>
    %c0_10 = arith.constant 0 : index
    %c0_11 = arith.constant 0 : index
    %28 = vector.load %arg4[%c0_10, %c0_11] : memref<128x128xf32, #tpu.memory_space<vmem>>, vector<128x128xf32>
    %cst_12 = arith.constant dense<0.000000e+00> : vector<16x128xf32>
    %29 = tpu.matmul %27, %28, %cst_12 {dimension_numbers = #tpu.dot_dimension_numbers<[1], [0], [0], [1], [0, 0, 1, 1], [], []>} : vector<16x128xf32>, vector<128x128xf32>, vector<16x128xf32> -> vector<16x128xf32>
    %c0_13 = arith.constant 0 : index
    %c0_14 = arith.constant 0 : index
    %30 = vector.load %arg5[%c0_13, %c0_14] : memref<1x128xf32, #tpu.memory_space<vmem>>, vector<1x128xf32>
    %31 = vector.broadcast %30 : vector<1x128xf32> to vector<16x128xf32>
    %32 = arith.addf %29, %31 : vector<16x128xf32>
    %c0_15 = arith.constant 0 : index
    %c0_16 = arith.constant 0 : index
    %33 = vector.load %arg6[%c0_15, %c0_16] : memref<1x128xf32, #tpu.memory_space<vmem>>, vector<1x128xf32>
    %c0_17 = arith.constant 0 : index
    %c0_18 = arith.constant 0 : index
    %34 = vector.load %arg7[%c0_17, %c0_18] : memref<1x128xf32, #tpu.memory_space<vmem>>, vector<1x128xf32>
    %cst_19 = arith.constant dense<0.000000e+00> : vector<16xf32>
    %35 = vector.multi_reduction <add>, %32, %cst_19 [1] : vector<16x128xf32> to vector<16xf32>
    %36 = vector.shape_cast %35 : vector<16xf32> to vector<16x1xf32>
    %cst_20 = arith.constant 3.125000e-02 : f32
    %37 = vector.broadcast %cst_20 : f32 to vector<16x1xf32>
    %38 = arith.mulf %36, %37 : vector<16x1xf32>
    %39 = arith.mulf %32, %32 : vector<16x128xf32>
    %cst_21 = arith.constant dense<0.000000e+00> : vector<16xf32>
    %40 = vector.multi_reduction <add>, %39, %cst_21 [1] : vector<16x128xf32> to vector<16xf32>
    %41 = vector.shape_cast %40 : vector<16xf32> to vector<16x1xf32>
    %cst_22 = arith.constant 3.125000e-02 : f32
    %42 = vector.broadcast %cst_22 : f32 to vector<16x1xf32>
    %43 = arith.mulf %41, %42 : vector<16x1xf32>
    %44 = arith.mulf %38, %38 : vector<16x1xf32>
    %45 = arith.subf %43, %44 : vector<16x1xf32>
    %cst_23 = arith.constant 9.99999974E-6 : f32
    %46 = vector.broadcast %cst_23 : f32 to vector<16x1xf32>
    %47 = arith.addf %45, %46 : vector<16x1xf32>
    %48 = math.rsqrt %47 : vector<16x1xf32>
    %cst_24 = arith.constant 0.000000e+00 : f32
    %49 = vector.broadcast %cst_24 : f32 to vector<16x1xf32>
    %50 = arith.subf %49, %38 : vector<16x1xf32>
    %51 = arith.mulf %50, %48 : vector<16x1xf32>
    %52 = vector.broadcast %48 : vector<16x1xf32> to vector<16x128xf32>
    %53 = arith.mulf %32, %52 : vector<16x128xf32>
    %54 = vector.broadcast %51 : vector<16x1xf32> to vector<16x128xf32>
    %55 = arith.addf %53, %54 : vector<16x128xf32>
    %56 = vector.broadcast %33 : vector<1x128xf32> to vector<16x128xf32>
    %57 = arith.mulf %55, %56 : vector<16x128xf32>
    %58 = vector.broadcast %34 : vector<1x128xf32> to vector<16x128xf32>
    %59 = arith.addf %57, %58 : vector<16x128xf32>
    %cst_25 = arith.constant 0.000000e+00 : f32
    %60 = vector.broadcast %cst_25 : f32 to vector<16x128xf32>
    %61 = arith.maximumf %59, %60 : vector<16x128xf32>
    %c0_26 = arith.constant 0 : index
    %c0_27 = arith.constant 0 : index
    %62 = vector.load %arg8[%c0_26, %c0_27] : memref<1x128xf32, #tpu.memory_space<vmem>>, vector<1x128xf32>
    %c0_28 = arith.constant 0 : index
    %c0_29 = arith.constant 0 : index
    %63 = vector.load %arg9[%c0_28, %c0_29] : memref<1x128xf32, #tpu.memory_space<vmem>>, vector<1x128xf32>
    %cst_30 = arith.constant dense<0.000000e+00> : vector<16xf32>
    %64 = vector.multi_reduction <add>, %61, %cst_30 [1] : vector<16x128xf32> to vector<16xf32>
    %65 = vector.shape_cast %64 : vector<16xf32> to vector<16x1xf32>
    %cst_31 = arith.constant 3.125000e-02 : f32
    %66 = vector.broadcast %cst_31 : f32 to vector<16x1xf32>
    %67 = arith.mulf %65, %66 : vector<16x1xf32>
    %68 = arith.mulf %61, %61 : vector<16x128xf32>
    %cst_32 = arith.constant dense<0.000000e+00> : vector<16xf32>
    %69 = vector.multi_reduction <add>, %68, %cst_32 [1] : vector<16x128xf32> to vector<16xf32>
    %70 = vector.shape_cast %69 : vector<16xf32> to vector<16x1xf32>
    %cst_33 = arith.constant 3.125000e-02 : f32
    %71 = vector.broadcast %cst_33 : f32 to vector<16x1xf32>
    %72 = arith.mulf %70, %71 : vector<16x1xf32>
    %73 = arith.mulf %67, %67 : vector<16x1xf32>
    %74 = arith.subf %72, %73 : vector<16x1xf32>
    %cst_34 = arith.constant 9.99999974E-6 : f32
    %75 = vector.broadcast %cst_34 : f32 to vector<16x1xf32>
    %76 = arith.addf %74, %75 : vector<16x1xf32>
    %77 = math.rsqrt %76 : vector<16x1xf32>
    %cst_35 = arith.constant 0.000000e+00 : f32
    %78 = vector.broadcast %cst_35 : f32 to vector<16x1xf32>
    %79 = arith.subf %78, %67 : vector<16x1xf32>
    %80 = arith.mulf %79, %77 : vector<16x1xf32>
    %81 = vector.broadcast %77 : vector<16x1xf32> to vector<16x128xf32>
    %82 = arith.mulf %61, %81 : vector<16x128xf32>
    %83 = vector.broadcast %80 : vector<16x1xf32> to vector<16x128xf32>
    %84 = arith.addf %82, %83 : vector<16x128xf32>
    %85 = vector.broadcast %62 : vector<1x128xf32> to vector<16x128xf32>
    %86 = arith.mulf %84, %85 : vector<16x128xf32>
    %87 = vector.broadcast %63 : vector<1x128xf32> to vector<16x128xf32>
    %88 = arith.addf %86, %87 : vector<16x128xf32>
    %c0_36 = arith.constant 0 : index
    %c0_37 = arith.constant 0 : index
    %89 = vector.load %arg10[%c0_36, %c0_37] : memref<128x128xf32, #tpu.memory_space<vmem>>, vector<128x128xf32>
    %cst_38 = arith.constant dense<0.000000e+00> : vector<16x128xf32>
    %90 = tpu.matmul %88, %89, %cst_38 {dimension_numbers = #tpu.dot_dimension_numbers<[1], [0], [0], [1], [0, 0, 1, 1], [], []>} : vector<16x128xf32>, vector<128x128xf32>, vector<16x128xf32> -> vector<16x128xf32>
    %c0_39 = arith.constant 0 : index
    %c0_40 = arith.constant 0 : index
    %91 = vector.load %arg11[%c0_39, %c0_40] : memref<1x128xf32, #tpu.memory_space<vmem>>, vector<1x128xf32>
    %92 = vector.broadcast %91 : vector<1x128xf32> to vector<16x128xf32>
    %93 = arith.addf %90, %92 : vector<16x128xf32>
    %c0_41 = arith.constant 0 : index
    %c0_42 = arith.constant 0 : index
    %94 = vector.load %arg12[%c0_41, %c0_42] : memref<1x128xf32, #tpu.memory_space<vmem>>, vector<1x128xf32>
    %c0_43 = arith.constant 0 : index
    %c0_44 = arith.constant 0 : index
    %95 = vector.load %arg13[%c0_43, %c0_44] : memref<1x128xf32, #tpu.memory_space<vmem>>, vector<1x128xf32>
    %cst_45 = arith.constant dense<0.000000e+00> : vector<16xf32>
    %96 = vector.multi_reduction <add>, %93, %cst_45 [1] : vector<16x128xf32> to vector<16xf32>
    %97 = vector.shape_cast %96 : vector<16xf32> to vector<16x1xf32>
    %cst_46 = arith.constant 1.280000e+02 : f32
    %98 = vector.broadcast %cst_46 : f32 to vector<16x1xf32>
    %99 = arith.divf %97, %98 : vector<16x1xf32>
    %100 = arith.mulf %93, %93 : vector<16x128xf32>
    %cst_47 = arith.constant dense<0.000000e+00> : vector<16xf32>
    %101 = vector.multi_reduction <add>, %100, %cst_47 [1] : vector<16x128xf32> to vector<16xf32>
    %102 = vector.shape_cast %101 : vector<16xf32> to vector<16x1xf32>
    %cst_48 = arith.constant 1.280000e+02 : f32
    %103 = vector.broadcast %cst_48 : f32 to vector<16x1xf32>
    %104 = arith.divf %102, %103 : vector<16x1xf32>
    %105 = arith.mulf %99, %99 : vector<16x1xf32>
    %106 = arith.subf %104, %105 : vector<16x1xf32>
    %cst_49 = arith.constant 9.99999974E-6 : f32
    %107 = vector.broadcast %cst_49 : f32 to vector<16x1xf32>
    %108 = arith.addf %106, %107 : vector<16x1xf32>
    %109 = math.rsqrt %108 : vector<16x1xf32>
    %cst_50 = arith.constant 0.000000e+00 : f32
    %110 = vector.broadcast %cst_50 : f32 to vector<16x1xf32>
    %111 = arith.subf %110, %99 : vector<16x1xf32>
    %112 = arith.mulf %111, %109 : vector<16x1xf32>
    %113 = vector.broadcast %109 : vector<16x1xf32> to vector<16x128xf32>
    %114 = arith.mulf %93, %113 : vector<16x128xf32>
    %115 = vector.broadcast %112 : vector<16x1xf32> to vector<16x128xf32>
    %116 = arith.addf %114, %115 : vector<16x128xf32>
    %117 = vector.broadcast %94 : vector<1x128xf32> to vector<16x128xf32>
    %118 = arith.mulf %116, %117 : vector<16x128xf32>
    %119 = vector.broadcast %95 : vector<1x128xf32> to vector<16x128xf32>
    %120 = arith.addf %118, %119 : vector<16x128xf32>
    %121 = arith.negf %120 : vector<16x128xf32>
    %122 = math.exp %121 : vector<16x128xf32>
    %cst_51 = arith.constant 1.000000e+00 : f32
    %123 = vector.broadcast %cst_51 : f32 to vector<16x128xf32>
    %124 = arith.addf %123, %122 : vector<16x128xf32>
    %125 = arith.divf %123, %124 : vector<16x128xf32>
    %c0_52 = arith.constant 0 : index
    %c0_53 = arith.constant 0 : index
    %126 = vector.load %arg14[%c0_52, %c0_53] : memref<16x128xf32, #tpu.memory_space<vmem>>, vector<16x128xf32>
    tpu.vector_store %arg14[%c0_52, %c0_53], %125 {strides = array<i32>} : memref<16x128xf32, #tpu.memory_space<vmem>>, vector<16x128xf32>,
    return
  }
  func.func @transform_0(%arg0: i32) -> (i32, i32) {
    %c0_i32 = arith.constant 0 : i32
    %c0_i32_0 = arith.constant 0 : i32
    return %arg0, %c0_i32 : i32, i32
  }
  func.func @transform_1(%arg0: i32) -> (i32, i32) {
    %c0_i32 = arith.constant 0 : i32
    %c0_i32_0 = arith.constant 0 : i32
    %c0_i32_1 = arith.constant 0 : i32
    return %c0_i32, %c0_i32_0 : i32, i32
  }
  func.func @transform_2(%arg0: i32) -> (i32, i32) {
    %c0_i32 = arith.constant 0 : i32
    %c0_i32_0 = arith.constant 0 : i32
    %c0_i32_1 = arith.constant 0 : i32
    return %c0_i32, %c0_i32_0 : i32, i32
  }
  func.func @transform_3(%arg0: i32) -> (i32, i32) {
    %c0_i32 = arith.constant 0 : i32
    %c0_i32_0 = arith.constant 0 : i32
    %c0_i32_1 = arith.constant 0 : i32
    return %c0_i32, %c0_i32_0 : i32, i32
  }
  func.func @transform_4(%arg0: i32) -> (i32, i32) {
    %c0_i32 = arith.constant 0 : i32
    %c0_i32_0 = arith.constant 0 : i32
    %c0_i32_1 = arith.constant 0 : i32
    return %c0_i32, %c0_i32_0 : i32, i32
  }
  func.func @transform_5(%arg0: i32) -> (i32, i32) {
    %c0_i32 = arith.constant 0 : i32
    %c0_i32_0 = arith.constant 0 : i32
    %c0_i32_1 = arith.constant 0 : i32
    return %c0_i32, %c0_i32_0 : i32, i32
  }
  func.func @transform_6(%arg0: i32) -> (i32, i32) {
    %c0_i32 = arith.constant 0 : i32
    %c0_i32_0 = arith.constant 0 : i32
    %c0_i32_1 = arith.constant 0 : i32
    return %c0_i32, %c0_i32_0 : i32, i32
  }
  func.func @transform_7(%arg0: i32) -> (i32, i32) {
    %c0_i32 = arith.constant 0 : i32
    %c0_i32_0 = arith.constant 0 : i32
    %c0_i32_1 = arith.constant 0 : i32
    return %c0_i32, %c0_i32_0 : i32, i32
  }
  func.func @transform_8(%arg0: i32) -> (i32, i32) {
    %c0_i32 = arith.constant 0 : i32
    %c0_i32_0 = arith.constant 0 : i32
    %c0_i32_1 = arith.constant 0 : i32
    return %c0_i32, %c0_i32_0 : i32, i32
  }
  func.func @transform_9(%arg0: i32) -> (i32, i32) {
    %c0_i32 = arith.constant 0 : i32
    %c0_i32_0 = arith.constant 0 : i32
    %c0_i32_1 = arith.constant 0 : i32
    return %c0_i32, %c0_i32_0 : i32, i32
  }
  func.func @transform_10(%arg0: i32) -> (i32, i32) {
    %c0_i32 = arith.constant 0 : i32
    %c0_i32_0 = arith.constant 0 : i32
    %c0_i32_1 = arith.constant 0 : i32
    return %c0_i32, %c0_i32_0 : i32, i32
  }
  func.func @transform_11(%arg0: i32) -> (i32, i32) {
    %c0_i32 = arith.constant 0 : i32
    %c0_i32_0 = arith.constant 0 : i32
    %c0_i32_1 = arith.constant 0 : i32
    return %c0_i32, %c0_i32_0 : i32, i32
  }
  func.func @transform_12(%arg0: i32) -> (i32, i32) {
    %c0_i32 = arith.constant 0 : i32
    %c0_i32_0 = arith.constant 0 : i32
    %c0_i32_1 = arith.constant 0 : i32
    return %c0_i32, %c0_i32_0 : i32, i32
  }
  func.func @transform_13(%arg0: i32) -> (i32, i32) {
    %c0_i32 = arith.constant 0 : i32
    %c0_i32_0 = arith.constant 0 : i32
    return %arg0, %c0_i32 : i32, i32
  }
}

</mosaic_0001>

<bundles_post_ra>
// kernel: autoencoder_forward.1
= control target key start
LH: loop header
LB: loop body
LE: loop exit
PB: predicated region body
PF: predicated region fallthrough
CT: control target
= control target key end

     0   :  { %s942_s0 = inlined_call_operand.vmem [shape: f32[16,128], index: 0, kind: input, shape index: {}]   ;;  %s943_s1 = inlined_call_operand.vmem [shape: f32[1,128], index: 1, kind: input, shape index: {}]   ;;  %s944_s2 = inlined_call_operand.vmem [shape: f32[1,128], index: 2, kind: input, shape index: {}]   ;;  %s945_s3 = inlined_call_operand.vmem [shape: f32[128,128], index: 3, kind: input, shape index: {}]   ;;  %s946_s4 = inlined_call_operand.vmem [shape: f32[1,128], index: 4, kind: input, shape index: {}]   ;;  %s947_s5 = inlined_call_operand.vmem [shape: f32[1,128], index: 5, kind: input, shape index: {}]   ;;  %s948_s6 = inlined_call_operand.vmem [shape: f32[1,128], index: 6, kind: input, shape index: {}]   ;;  %s949_s7 = inlined_call_operand.vmem [shape: f32[1,128], index: 7, kind: input, shape index: {}]   ;;  %s950_s8 = inlined_call_operand.vmem [shape: f32[1,128], index: 8, kind: input, shape index: {}]   ;;  %s951_s9 = inlined_call_operand.vmem [shape: f32[128,128], index: 9, kind: input, shape index: {}]   ;;  %s952_s10 = inlined_call_operand.vmem [shape: f32[1,128], index: 10, kind: input, shape index: {}]   ;;  %s953_s11 = inlined_call_operand.vmem [shape: f32[1,128], index: 11, kind: input, shape index: {}]   ;;  %s954_s12 = inlined_call_operand.vmem [shape: f32[1,128], index: 12, kind: input, shape index: {}]   ;;  %s955_s13 = inlined_call_operand.hbm [shape: f32[16,128], index: 13, kind: output, shape index: {}]  }
   0x1   :  { %v777_v0 = vld [vmem:[%s942_s0] sm:$0xff]  ;;  %v782_v1 = vld [vmem:[%s942_s0 + $0x8] sm:$0xff] }
   0x2   :  { %v96_v2 = vld [vmem:[%s945_s3] sm:$0xff]  ;;  %49 = vadd.xlane.f32.xlu0 %v777_v0  ;;  %v56_v3 = vmul.f32 %v777_v0, %v777_v0  ;;  %v97_v4 = vld [vmem:[%s945_s3 + $0x8] sm:$0xff] }
   0x3   :  { %18 = vsyncpa [#allocation3], 0  ;;  %v586_v5 = vpack.c.bf16 %v97_v4, %v96_v2  ;;  %v57_v6 = vmul.f32 %v782_v1, %v782_v1  ;;  %v98_v7 = vld [vmem:[%s945_s3 + $0x10] sm:$0xff]  ;;  %v99_v8 = vld [vmem:[%s945_s3 + $0x18] sm:$0xff] }
   0x4   :  { %58 = vadd.xlane.f32.xlu1 %v56_v3  ;;  %v590_v9 = vpack.c.bf16 %v99_v8, %v98_v7  ;;  %v100_v10 = vld [vmem:[%s945_s3 + $0x20] sm:$0xff]  ;;  %v101_v11 = vld [vmem:[%s945_s3 + $0x28] sm:$0xff]  ;;  %v102_v13 = vld [vmem:[%s945_s3 + $0x30] sm:$0xff] }
   0x5   :  { %587 = vmatprep.subr.bf16.mxu0 %v586_v5  ;;  %v594_v12 = vpack.c.bf16 %v101_v11, %v100_v10  ;;  %v103_v14 = vld [vmem:[%s945_s3 + $0x38] sm:$0xff]  ;;  %v104_v16 = vld [vmem:[%s945_s3 + $0x40] sm:$0xff]  ;;  %v105_v17 = vld [vmem:[%s945_s3 + $0x48] sm:$0xff] }
   0x6   :  { %51 = vadd.xlane.f32.xlu0 %v782_v1  ;;  %589 = vmatpush3.bf16.msra.mxu0 %v586_v5  ;;  %v598_v15 = vpack.c.bf16 %v103_v14, %v102_v13  ;;  %v106_v18 = vld [vmem:[%s945_s3 + $0x50] sm:$0xff]  ;;  %v602_v19 = vpack.c.bf16 %v105_v17, %v104_v16  ;;  %v107_v20 = vld [vmem:[%s945_s3 + $0x58] sm:$0xff]  ;;  %v108_v22 = vld [vmem:[%s945_s3 + $0x60] sm:$0xff] }
   0x7   :  { %591 = vmatprep.subr.bf16.mxu0 %v590_v9  ;;  %v606_v21 = vpack.c.bf16 %v107_v20, %v106_v18  ;;  %v109_v23 = vld [vmem:[%s945_s3 + $0x68] sm:$0xff]  ;;  %v110_v25 = vld [vmem:[%s945_s3 + $0x70] sm:$0xff]  ;;  %v111_v26 = vld [vmem:[%s945_s3 + $0x78] sm:$0xff] }
   0x8   :  { %60 = vadd.xlane.f32.xlu1 %v57_v6  ;;  %v610_v24 = vpack.c.bf16 %v109_v23, %v108_v22  ;;  %v614_v27 = vpack.c.bf16 %v111_v26, %v110_v25  ;;  %v468_v46 = vld [vmem:[%s943_s1] ss:$0 sm:$0xff]  ;;  %v293_v2 = vld [vmem:[%s951_s9 + $0x8] sm:$0xff] }
   0x9   :  { %v469_v50 = vld [vmem:[%s944_s2] ss:$0 sm:$0xff] }
   0xa   :  { %593 = vmatpush3.bf16.msra.mxu0 %v590_v9  ;;  %v470_v58 = vld [vmem:[%s946_s4] ss:$0 sm:$0xff] }
   0xb   :  { %595 = vmatprep.subr.bf16.mxu0 %v594_v12 }
   0xe   :  { %597 = vmatpush3.bf16.msra.mxu0 %v594_v12 }
   0xf   :  { %599 = vmatprep.subr.bf16.mxu0 %v598_v15 }
  0x12   :  { %601 = vmatpush3.bf16.msra.mxu0 %v598_v15 }
  0x13   :  { %603 = vmatprep.subr.bf16.mxu0 %v602_v19 }
  0x16   :  { %605 = vmatpush3.bf16.msra.mxu0 %v602_v19 }
  0x17   :  { %607 = vmatprep.subr.bf16.mxu0 %v606_v21 }
  0x1a   :  { %609 = vmatpush3.bf16.msra.mxu0 %v606_v21 }
  0x1b   :  { %611 = vmatprep.subr.bf16.mxu0 %v610_v24 }
  0x1e   :  { %613 = vmatpush3.bf16.msra.mxu0 %v610_v24  ;;  %v471_v24 = vld [vmem:[%s947_s5] ss:$0 sm:$0xff] }
  0x1f   :  { %615 = vmatprep.subr.bf16.mxu0 %v614_v27 }
  0x22   :  { %617 = vmatpush3.bf16.msra.mxu0 %v614_v27 }
  0x8f   :  { %v50_v28 = vpop.xlane.xlu0 %49 }
  0x90   :  { %v54_v29 = vmul.f32 0.0078125, %v50_v28  ;;  %v472_v28 = vld [vmem:[%s948_s6] ss:$0 sm:$0xff] }
  0x91   :  { %v59_v30 = vpop.xlane.xlu1 %58 }
  0x92   :  { %v64_v31 = vmul.f32 %v54_v29, %v54_v29  ;;  %v62_v32 = vmul.f32 0.0078125, %v59_v30  ;;  %v72_v42 = vsub.f32 0.0, %v54_v29 }
  0x93   :  { %v52_v33 = vpop.xlane.xlu0 %51 }
  0x94   :  { %v66_v34 = vsub.f32 %v62_v32, %v64_v31  ;;  %v55_v35 = vmul.f32 0.0078125, %v52_v33 }
  0x95   :  { %v61_v36 = vpop.xlane.xlu1 %60 }
  0x96   :  { %v68_v37 = vadd.f32 1e-05, %v66_v34  ;;  %v65_v38 = vmul.f32 %v55_v35, %v55_v35  ;;  %v63_v39 = vmul.f32 0.0078125, %v61_v36  ;;  %v73_v47 = vsub.f32 0.0, %v55_v35 }
  0x98   :  { %653 = vrsqrt.f32 %v68_v37  ;;  %v67_v40 = vsub.f32 %v63_v39, %v65_v38  ;;  %v294_v38 = vld [vmem:[%s951_s9 + $0x10] sm:$0xff]  ;;  %v295_v39 = vld [vmem:[%s951_s9 + $0x18] sm:$0xff] }
  0x9a   :  { %v69_v41 = vadd.f32 1e-05, %v67_v40  ;;  %v622_v40 = vpack.c.bf16 %v295_v39, %v294_v38 }
  0x9c   :  { %655 = vrsqrt.f32 %v69_v41  ;;  %v296_v41 = vld [vmem:[%s951_s9 + $0x20] sm:$0xff] }
  0xa2   :  { %v654_v43 = vpop.eup %653 }
  0xa3   :  { %v74_v44 = vmul.f32 %v654_v43, %v72_v42  ;;  %v76_v45 = vmul.f32 %v654_v43, %v777_v0  ;;  %v297_v42 = vld [vmem:[%s951_s9 + $0x28] sm:$0xff] }
  0xa4   :  { %v626_v43 = vpack.c.bf16 %v297_v42, %v296_v41 }
  0xa5   :  { %v78_v48 = vadd.f32 %v76_v45, %v74_v44  ;;  %v298_v44 = vld [vmem:[%s951_s9 + $0x30] sm:$0xff]  ;;  %v299_v45 = vld [vmem:[%s951_s9 + $0x38] sm:$0xff] }
  0xa6   :  { %v656_v49 = vpop.eup %655 }
  0xa7   :  { %v75_v51 = vmul.f32 %v656_v49, %v73_v47  ;;  %v77_v52 = vmul.f32 %v656_v49, %v782_v1  ;;  %v86_v53 = vmul.f32 %v468_v46, %v78_v48  ;;  %v292_v1 = vld [vmem:[%s951_s9] sm:$0xff]  ;;  %v301_v48 = vld [vmem:[%s951_s9 + $0x48] sm:$0xff]  ;;  %v302_v49 = vld [vmem:[%s951_s9 + $0x50] sm:$0xff] }
  0xa8   :  { %v618_v3 = vpack.c.bf16 %v293_v2, %v292_v1  ;;  %v300_v47 = vld [vmem:[%s951_s9 + $0x40] sm:$0xff] }
  0xa9   :  { %v79_v54 = vadd.f32 %v77_v52, %v75_v51  ;;  %v94_v55 = vadd.f32 %v469_v50, %v86_v53  ;;  %v303_v51 = vld [vmem:[%s951_s9 + $0x58] sm:$0xff]  ;;  %v304_v53 = vld [vmem:[%s951_s9 + $0x60] sm:$0xff] }
  0xaa   :  { %619 = vmatprep.subr.bf16.mxu1 %v618_v3  ;;  %v638_v52 = vpack.c.bf16 %v303_v51, %v302_v49 }
  0xab   :  { %v87_v56 = vmul.f32 %v468_v46, %v79_v54  ;;  %548 = vmatprep.mubr.f32.mxu0 %v94_v55  ;;  %621 = vmatpush3.bf16.msra.mxu1 %v618_v3  ;;  %v630_v46 = vpack.c.bf16 %v299_v45, %v298_v44  ;;  %v305_v54 = vld [vmem:[%s951_s9 + $0x68] sm:$0xff] }
  0xac   :  { %623 = vmatprep.subr.bf16.mxu1 %v622_v40  ;;  %v642_v55 = vpack.c.bf16 %v305_v54, %v304_v53  ;;  %v476_v54 = vld [vmem:[%s953_s11] ss:$0 sm:$0xff]  ;;  %s701_s11 = smov [#allocation2]  }
  0xad   :  { %v95_v57 = vadd.f32 %v469_v50, %v87_v56  ;;  %v634_v50 = vpack.c.bf16 %v301_v48, %v300_v47  ;;  %v306_v56 = vld [vmem:[%s951_s9 + $0x70] sm:$0xff]  ;;  %s457_s3 = sshll.u32 %s701_s11, 4  ;;  %s458_s3 = int_to_ptr.vmem [resolvable:$true] %s457_s3 }
  0xae   :  { %p682_p1 = scmp.lt.s32.totalorder %s458_s3, %s458_s3 }
  0xaf   :  { %549 = vmatmul.mubr.f32.vlgmr.msra.gmra.mrb[0].mxu0 %v95_v57  ;;  %625 = vmatpush3.bf16.msra.mxu1 %v622_v40  ;;  %v307_v57 = vld [vmem:[%s951_s9 + $0x78] sm:$0xff] }
  0xb0   :  { %627 = vmatprep.subr.bf16.mxu1 %v626_v43 }
  0xb3   :  { %629 = vmatpush3.bf16.msra.mxu1 %v626_v43 }
  0xb4   :  { %631 = vmatprep.subr.bf16.mxu1 %v630_v46 }
  0xb7   :  { %633 = vmatpush3.bf16.msra.mxu1 %v630_v46 }
  0xb8   :  { %635 = vmatprep.subr.bf16.mxu1 %v634_v50 }
  0xbb   :  { %637 = vmatpush3.bf16.msra.mxu1 %v634_v50 }
  0xbc   :  { %639 = vmatprep.subr.bf16.mxu1 %v638_v52 }
  0xbf   :  { %641 = vmatpush3.bf16.msra.mxu1 %v638_v52 }
  0xc0   :  { %643 = vmatprep.subr.bf16.mxu1 %v642_v55 }
  0xc3   :  { %645 = vmatpush3.bf16.msra.mxu1 %v642_v55 }
 0x182   :  { %v550_v59 = vpop.f32.mrb[0].mxu0 }
 0x183   :  { %v191_v60 = vadd.f32 %v550_v59, %v470_v58  ;;  %v185_v61 = vpop.f32.mrb[1].mxu0 }
 0x184   :  { %v186_v62 = vadd.f32 %v470_v58, %v185_v61  ;;  %v646_v58 = vpack.c.bf16 %v307_v57, %v306_v56  ;;  %v477_v57 = vld [vmem:[%s954_s12] ss:$0 sm:$0xff]  ;;  %s677_s12 = scalar_lea.vmem %s458_s3, 256 }
 0x185   :  { %198 = vadd.xlane.f32.xlu1 %v191_v60  ;;  %v203_v63 = vmul.f32 %v191_v60, %v191_v60  ;;  %p678_p0 = scmp.ne.s32.totalorder %s458_s3, %s677_s12  ;;  %p683_p2 = scmp.lt.s32.totalorder %s677_s12, %s677_s12 }
 0x186   :  { %196 = vadd.xlane.f32.xlu0 %v186_v62  ;;  %v202_v0 = vmul.f32 %v186_v62, %v186_v62  ;;  %647 = vmatprep.subr.bf16.mxu1 %v646_v58 }
 0x187   :  { %649 = vmatpush3.bf16.msra.mxu1 %v646_v58  ;;  %p684_p3 = por %p683_p2, %p682_p1 }
 0x189   :  { %206 = vadd.xlane.f32.xlu1 %v203_v63  ;;  %p685_p4 = pnand %p684_p3, %p678_p0 }
 0x18a   :  { %204 = vadd.xlane.f32.xlu0 %v202_v0 }
 0x212   :  { %v199_v4 = vpop.xlane.xlu1 %198 }
 0x213   :  { %v201_v5 = vmul.f32 0.03125, %v199_v4  ;;  %v197_v6 = vpop.xlane.xlu0 %196 }
 0x214   :  { %v200_v7 = vmul.f32 0.03125, %v197_v6 }
 0x215   :  { %v211_v9 = vmul.f32 %v201_v5, %v201_v5  ;;  %v219_v18 = vsub.f32 0.0, %v201_v5 }
 0x216   :  { %v207_v8 = vpop.xlane.xlu1 %206  ;;  %v210_v12 = vmul.f32 %v200_v7, %v200_v7  ;;  %v218_v20 = vsub.f32 0.0, %v200_v7 }
 0x217   :  { %v209_v10 = vmul.f32 0.03125, %v207_v8  ;;  %v205_v11 = vpop.xlane.xlu0 %204 }
 0x218   :  { %v208_v13 = vmul.f32 0.03125, %v205_v11 }
 0x219   :  { %v213_v14 = vsub.f32 %v209_v10, %v211_v9 }
 0x21a   :  { %v212_v15 = vsub.f32 %v208_v13, %v210_v12 }
 0x21b   :  { %v215_v16 = vadd.f32 1e-05, %v213_v14 }
 0x21c   :  { %v214_v17 = vadd.f32 1e-05, %v212_v15  ;;  %v473_v15 = vld [vmem:[%s949_s7] ss:$0 sm:$0xff] }
 0x21d   :  { %657 = vrsqrt.f32 %v215_v16 }
 0x21e   :  { %659 = vrsqrt.f32 %v214_v17 }
 0x227   :  { %v658_v19 = vpop.eup %657 }
 0x228   :  { %v660_v21 = vpop.eup %659  ;;  %v221_v22 = vmul.f32 %v658_v19, %v219_v18  ;;  %v223_v23 = vmul.f32 %v658_v19, %v191_v60 }
 0x229   :  { %v220_v25 = vmul.f32 %v660_v21, %v218_v20  ;;  %v222_v26 = vmul.f32 %v660_v21, %v186_v62  ;;  %v474_v20 = vld [vmem:[%s950_s8] ss:$0 sm:$0xff] }
 0x22a   :  { %v225_v27 = vadd.f32 %v223_v23, %v221_v22 }
 0x22b   :  { %v224_v29 = vadd.f32 %v222_v26, %v220_v25  ;;  %v475_v25 = vld [vmem:[%s952_s10] ss:$0 sm:$0xff] }
 0x22c   :  { %v233_v30 = vmul.f32 %v471_v24, %v225_v27 }
 0x22d   :  { %v232_v31 = vmul.f32 %v471_v24, %v224_v29 }
 0x22e   :  { %v241_v32 = vadd.f32 %v472_v28, %v233_v30 }
 0x22f   :  { %v240_v33 = vadd.f32 %v472_v28, %v232_v31 }
 0x230   :  { %v861_v34 = vmax.f32 %v241_v32, 0.0 }
 0x231   :  { %v863_v35 = vmax.f32 %v240_v33, 0.0 }
 0x232   :  { %248 = vadd.xlane.f32.xlu1 %v861_v34  ;;  %v253_v36 = vmul.f32 %v861_v34, %v861_v34 }
 0x233   :  { %246 = vadd.xlane.f32.xlu0 %v863_v35  ;;  %v252_v37 = vmul.f32 %v863_v35, %v863_v35 }
 0x236   :  { %256 = vadd.xlane.f32.xlu1 %v253_v36 }
 0x237   :  { %254 = vadd.xlane.f32.xlu0 %v252_v37 }
 0x2bf   :  { %v249_v59 = vpop.xlane.xlu1 %248 }
 0x2c0   :  { %v251_v60 = vmul.f32 0.03125, %v249_v59  ;;  %v247_v61 = vpop.xlane.xlu0 %246 }
 0x2c1   :  { %v250_v62 = vmul.f32 0.03125, %v247_v61 }
 0x2c2   :  { %v261_v0 = vmul.f32 %v251_v60, %v251_v60  ;;  %v269_v9 = vsub.f32 0.0, %v251_v60 }
 0x2c3   :  { %v257_v63 = vpop.xlane.xlu1 %256  ;;  %v260_v3 = vmul.f32 %v250_v62, %v250_v62  ;;  %v268_v11 = vsub.f32 0.0, %v250_v62 }
 0x2c4   :  { %v259_v1 = vmul.f32 0.03125, %v257_v63  ;;  %v255_v2 = vpop.xlane.xlu0 %254 }
 0x2c5   :  { %v258_v4 = vmul.f32 0.03125, %v255_v2 }
 0x2c6   :  { %v263_v5 = vsub.f32 %v259_v1, %v261_v0 }
 0x2c7   :  { %v262_v6 = vsub.f32 %v258_v4, %v260_v3 }
 0x2c8   :  { %v265_v7 = vadd.f32 1e-05, %v263_v5 }
 0x2c9   :  { %v264_v8 = vadd.f32 1e-05, %v262_v6 }
 0x2ca   :  { %661 = vrsqrt.f32 %v265_v7 }
 0x2cb   :  { %663 = vrsqrt.f32 %v264_v8 }
 0x2d4   :  { %v662_v10 = vpop.eup %661 }
 0x2d5   :  { %v664_v12 = vpop.eup %663  ;;  %v271_v13 = vmul.f32 %v662_v10, %v269_v9  ;;  %v273_v14 = vmul.f32 %v662_v10, %v861_v34 }
 0x2d6   :  { %v270_v16 = vmul.f32 %v664_v12, %v268_v11  ;;  %v272_v17 = vmul.f32 %v664_v12, %v863_v35 }
 0x2d7   :  { %v275_v18 = vadd.f32 %v273_v14, %v271_v13 }
 0x2d8   :  { %v274_v19 = vadd.f32 %v272_v17, %v270_v16 }
 0x2d9   :  { %v283_v21 = vmul.f32 %v473_v15, %v275_v18 }
 0x2da   :  { %v282_v22 = vmul.f32 %v473_v15, %v274_v19 }
 0x2db   :  { %v291_v24 = vadd.f32 %v474_v20, %v283_v21 }
 0x2dc   :  { %v290_v23 = vadd.f32 %v474_v20, %v282_v22 }
 0x2de   :  { %583 = vmatprep.mubr.f32.mxu1 %v290_v23 }
 0x2df   :  { %584 = vmatmul.mubr.f32.vlgmr.msra.gmra.mrb[0].mxu1 %v291_v24 }
 0x3b2   :  { %v585_v26 = vpop.f32.mrb[0].mxu1 }
 0x3b3   :  { %v387_v27 = vadd.f32 %v585_v26, %v475_v25  ;;  %v381_v28 = vpop.f32.mrb[1].mxu1 }
 0x3b4   :  { %v382_v29 = vadd.f32 %v475_v25, %v381_v28 }
 0x3b5   :  { %394 = vadd.xlane.f32.xlu1 %v387_v27  ;;  %v399_v30 = vmul.f32 %v387_v27, %v387_v27 }
 0x3b6   :  { %392 = vadd.xlane.f32.xlu0 %v382_v29  ;;  %v398_v31 = vmul.f32 %v382_v29, %v382_v29 }
 0x3b9   :  { %402 = vadd.xlane.f32.xlu1 %v399_v30 }
 0x3ba   :  { %400 = vadd.xlane.f32.xlu0 %v398_v31 }
 0x442   :  { %v395_v32 = vpop.xlane.xlu1 %394 }
 0x443   :  { %v397_v33 = vmul.f32 0.0078125, %v395_v32  ;;  %v393_v34 = vpop.xlane.xlu0 %392 }
 0x444   :  { %v396_v35 = vmul.f32 0.0078125, %v393_v34 }
 0x445   :  { %v407_v37 = vmul.f32 %v397_v33, %v397_v33  ;;  %v415_v46 = vsub.f32 0.0, %v397_v33 }
 0x446   :  { %v403_v36 = vpop.xlane.xlu1 %402  ;;  %v406_v40 = vmul.f32 %v396_v35, %v396_v35  ;;  %v414_v48 = vsub.f32 0.0, %v396_v35 }
 0x447   :  { %v405_v38 = vmul.f32 0.0078125, %v403_v36  ;;  %v401_v39 = vpop.xlane.xlu0 %400 }
 0x448   :  { %v404_v41 = vmul.f32 0.0078125, %v401_v39 }
 0x449   :  { %v409_v42 = vsub.f32 %v405_v38, %v407_v37 }
 0x44a   :  { %v408_v43 = vsub.f32 %v404_v41, %v406_v40 }
 0x44b   :  { %v411_v44 = vadd.f32 1e-05, %v409_v42 }
 0x44c   :  { %v410_v45 = vadd.f32 1e-05, %v408_v43 }
 0x44d   :  { %665 = vrsqrt.f32 %v411_v44 }
 0x44e   :  { %667 = vrsqrt.f32 %v410_v45 }
 0x457   :  { %v666_v47 = vpop.eup %665 }
 0x458   :  { %v668_v49 = vpop.eup %667  ;;  %v417_v50 = vmul.f32 %v666_v47, %v415_v46  ;;  %v419_v51 = vmul.f32 %v666_v47, %v387_v27 }
 0x459   :  { %v416_v52 = vmul.f32 %v668_v49, %v414_v48  ;;  %v418_v53 = vmul.f32 %v668_v49, %v382_v29 }
 0x45a   :  { %v421_v55 = vadd.f32 %v419_v51, %v417_v50 }
 0x45b   :  { %v420_v56 = vadd.f32 %v418_v53, %v416_v52 }
 0x45c   :  { %v429_v58 = vmul.f32 %v476_v54, %v421_v55 }
 0x45d   :  { %v428_v59 = vmul.f32 %v476_v54, %v420_v56 }
 0x45e   :  { %v437_v60 = vadd.f32 %v477_v57, %v429_v58 }
 0x45f   :  { %v436_v61 = vadd.f32 %v477_v57, %v428_v59 }
 0x460   :  { %v479_v62 = vmul.f32 -1.442695, %v437_v60 }
 0x461   :  { %v478_v63 = vmul.f32 -1.442695, %v436_v61 }
 0x462   :  { %669 = vpow2.f32 %v479_v62 }
 0x463   :  { %671 = vpow2.f32 %v478_v63 }
 0x46c   :  { %v670_v0 = vpop.eup %669 }
 0x46d   :  { %v672_v1 = vpop.eup %671  ;;  %v445_v2 = vadd.f32 1.0, %v670_v0 }
 0x46e   :  { %v444_v3 = vadd.f32 1.0, %v672_v1 }
 0x46f   :  { %673 = vrcp.f32 %v445_v2 }
 0x470   :  { %675 = vrcp.f32 %v444_v3 }
 0x479   :  { %v674_v4 = vpop.eup %673 }
 0x47a   :  { %v676_v5 = vpop.eup %675  ;;  %451 = vst [vmem:[#allocation2 + $0x8] sm:$0xff] %v674_v4 }
 0x47b   :  { %450 = vst [vmem:[#allocation2] sm:$0xff] %v676_v5 }
 0x47c   :  { %688 = shalt.err (!%p685_p4)
}
 0x47d   :  { %s689_s27 = scalar_lea.hbm %s955_s13, 256 }
 0x47e   :  { %p690_p5 = scmp.ne.s32.totalorder %s955_s13, %s689_s27  ;;  %p693_p6 = scmp.lt.u32.totalorder %s689_s27, %s955_s13 }
 0x480   :  { %p695_p7 = pnand %p693_p6, %p690_p5 }
 0x482   :  { %698 = shalt.err (!%p695_p7)
}
 0x483   :  { %s702_s30 = smov 128   ;;  %s703_s14 = smov 8  }
 0x484   :  { %463 = dma.vmem_to_hbm [thread:$0]  %s458_s3, 256, %s955_s13, [#allocation3], %s702_s30, %s702_s30, %s703_s14  }
 0x485   :  { %699 = dma.done.wait [#allocation3], 256  }
 0x486   :  { %700 = vsyncadd [#allocation3], 4294967040 }
 0x487   :  { %467 = vsyncpa [#allocation3], 1 }

</bundles_post_ra>
